<compile_context>
chip_gen: v7x
topology: tpu7x:2x2x1
jax: 0.10.0
libtpu: 0.0.40
codegen_flags: <defaults>
</compile_context>

<pallas_src>
import functools

import jax
import jax.numpy as jnp
import numpy as np
from jax.experimental import pallas as pl
from jax.experimental.pallas import tpu as pltpu


def separator_mlp_kernel(x_ref, w1_ref, b1_ref, w2_ref, b2_ref,
                         score_ref, pos_node_ref):
    """Per row-tile: Linear(D,2D)+foldedBN -> ReLU -> Linear(2D,D) -> Sigmoid."""
    x = x_ref[...]                                                    # [T, D] bf16

    # Linear(D, 2D) with BatchNorm(eval) folded into the weights, f32 accumulate.
    h = jnp.dot(x, w1_ref[...], preferred_element_type=jnp.float32)  # [T, 2D] f32
    h = h + b1_ref[...]
    h = jnp.maximum(h, 0.0)                                           # ReLU

    # Linear(2D, D) + Sigmoid, bf16 MXU inputs, f32 accumulate.
    z = jnp.dot(h.astype(w2_ref.dtype), w2_ref[...],
                preferred_element_type=jnp.float32)                   # [T, D] f32
    z = z + b2_ref[...]
    score = jax.nn.sigmoid(z)

    score_ref[...] = score
    # score.mean(1): per-node positive score (lane reduction -> XLU slot).
    inv_d = jnp.float32(1.0 / score.shape[-1])
    pos_node_ref[...] = jnp.sum(score, axis=1, keepdims=True) * inv_d  # [T, 1]


def _round_up(x, m):
    return ((x + m - 1) // m) * m


def _pick_tile_n(n):
    if n >= 1024:
        return 512
    if n >= 256:
        return 256
    if n >= 128:
        return 128
    return max(8, _round_up(n, 8))


@functools.partial(jax.jit, static_argnames=("num_graphs",))
def separator_forward(node_feat, batch_ids, params, num_graphs):
    """node_feat: [N, D] f32, batch_ids: [N] int32 in [0, num_graphs)."""
    n, d = node_feat.shape
    hdim = 2 * d

    w1, b1, gamma, beta, run_mean, run_var, w2, b2 = (
        params["w1"], params["b1"], params["gamma"], params["beta"],
        params["run_mean"], params["run_var"], params["w2"], params["b2"])

    # ---- host-side prep: fold eval-mode BatchNorm1d into W1 / b1 ----
    eps = 1e-5
    scale = gamma / jnp.sqrt(run_var + eps)                 # [2D]
    shift = beta - run_mean * scale                         # [2D]
    w1_f = (w1 * scale[None, :]).astype(jnp.bfloat16)       # [D, 2D] bf16
    b1_f = (b1 * scale + shift).reshape(1, hdim)            # [1, 2D] f32
    w2_b = w2.astype(jnp.bfloat16)                          # [2D, D] bf16
    b2_r = b2.reshape(1, d)                                 # [1, D]  f32

    x_b = node_feat.astype(jnp.bfloat16)                    # halve HBM bytes for x

    # ---- row tiling over N ----
    tile_n = _pick_tile_n(n)
    n_pad = _round_up(n, tile_n)
    if n_pad != n:
        x_b = jnp.pad(x_b, ((0, n_pad - n), (0, 0)))
    grid = (n_pad // tile_n,)

    # VMEM budget: double-buffered x/score/pos_node tiles + resident weights
    # + intermediates, with headroom; capped at 32 MiB (safe on v5e/v6e/v7x).
    tile_in = tile_n * d * 2
    tile_out = tile_n * d * 4 + tile_n * 4
    weights = d * hdim * 2 + hdim * d * 2 + hdim * 4 + d * 4
    interm = tile_n * hdim * 4 + tile_n * d * 4
    est = 2 * (tile_in + tile_out) + weights + interm
    vmem_limit = int(min(32 * 2**20, max(4 * est, 4 * 2**20)))

    const = lambda shape: pl.BlockSpec(shape, lambda i: tuple(0 for _ in shape))

    score_p, pos_node_p = pl.pallas_call(
        separator_mlp_kernel,
        out_shape=(
            jax.ShapeDtypeStruct((n_pad, d), jnp.float32),
            jax.ShapeDtypeStruct((n_pad, 1), jnp.float32),
        ),
        grid=grid,
        in_specs=[
            pl.BlockSpec((tile_n, d), lambda i: (i, 0)),    # x tile
            const((d, hdim)),                               # W1 (BN-folded, bf16)
            const((1, hdim)),                               # b1 (folded)
            const((hdim, d)),                               # W2 (bf16)
            const((1, d)),                                  # b2
        ],
        out_specs=(
            pl.BlockSpec((tile_n, d), lambda i: (i, 0)),    # score tile
            pl.BlockSpec((tile_n, 1), lambda i: (i, 0)),    # pos_node tile
        ),
        compiler_params=pltpu.CompilerParams(
            dimension_semantics=("parallel",),              # megacore-shardable
            vmem_limit_bytes=vmem_limit,
        ),
    )(x_b, w1_f, b1_f, w2_b, b2_r)

    score = score_p[:n]
    pos_node = pos_node_p[:n, 0]

    # scatter_add over data.batch (tiny; done in XLA so the row axis stays
    # parallel).  neg is derived from per-graph node counts:
    # sum(1 - p) = count - sum(p).
    pos_sum = jax.ops.segment_sum(pos_node, batch_ids, num_segments=num_graphs)
    counts = jax.ops.segment_sum(jnp.ones((n,), jnp.float32), batch_ids,
                                 num_segments=num_graphs)
    pos = pos_sum + 1e-8
    neg = (counts - pos_sum) + 1e-8
    return score, pos, neg


def init_params(key, emb_d):
    h = 2 * emb_d
    k1, k2, k3, k4 = jax.random.split(key, 4)
    # nn.Linear default init: U(-1/sqrt(fan_in), 1/sqrt(fan_in))
    lim1 = 1.0 / np.sqrt(emb_d)
    lim2 = 1.0 / np.sqrt(h)
    return {
        "w1": jax.random.uniform(k1, (emb_d, h), jnp.float32, -lim1, lim1),
        "b1": jax.random.uniform(k2, (h,), jnp.float32, -lim1, lim1),
        "gamma": jnp.ones((h,), jnp.float32),
        "beta": jnp.zeros((h,), jnp.float32),
        "run_mean": jnp.zeros((h,), jnp.float32),
        "run_var": jnp.ones((h,), jnp.float32),
        "w2": jax.random.uniform(k3, (h, emb_d), jnp.float32, -lim2, lim2),
        "b2": jax.random.uniform(k4, (emb_d,), jnp.float32, -lim2, lim2),
    }


def reference_forward(node_feat, batch_ids, params, num_graphs):
    """Pure-f32 reference matching the PyTorch module (eval-mode BN)."""
    eps = 1e-5
    h = node_feat @ params["w1"] + params["b1"]
    h = (h - params["run_mean"]) / jnp.sqrt(params["run_var"] + eps)
    h = h * params["gamma"] + params["beta"]
    h = jnp.maximum(h, 0.0)
    score = jax.nn.sigmoid(h @ params["w2"] + params["b2"])
    pos_node = score.mean(axis=1)
    pos = jax.ops.segment_sum(pos_node, batch_ids, num_segments=num_graphs) + 1e-8
    neg = jax.ops.segment_sum(1.0 - pos_node, batch_ids,
                              num_segments=num_graphs) + 1e-8
    return score, pos, neg


if __name__ == "__main__":
    key = jax.random.PRNGKey(0)
    k_feat, k_param = jax.random.split(key)

    N = 512         # total nodes across the batch of graphs
    EMB_D = 32      # args.emb_dim
    NUM_GRAPHS = 8

    # Stand-in for r_gnn(data) output (see TODO above).
    node_feat = jax.random.normal(k_feat, (N, EMB_D), dtype=jnp.float32)
    # Deterministic graph assignment: 64 nodes per graph.
    batch_ids = jnp.repeat(jnp.arange(NUM_GRAPHS, dtype=jnp.int32),
                           N // NUM_GRAPHS)

    params = init_params(k_param, EMB_D)

    score, pos_b, neg_b = separator_forward(node_feat, batch_ids, params,
                                            NUM_GRAPHS)
    jax.block_until_ready((score, pos_b, neg_b))

    score_r, pos_r, neg_r = reference_forward(node_feat, batch_ids, params,
                                              NUM_GRAPHS)
    # bf16 MXU inputs with f32 accumulation -> loosened tolerances vs f32 ref.
    np.testing.assert_allclose(np.asarray(score), np.asarray(score_r),
                               rtol=3e-2, atol=3e-2)
    np.testing.assert_allclose(np.asarray(pos_b), np.asarray(pos_r),
                               rtol=2e-2, atol=1e-1)
    np.testing.assert_allclose(np.asarray(neg_b), np.asarray(neg_r),
                               rtol=2e-2, atol=1e-1)

    print("KERNEL_OK")
</pallas_src>

<mosaic_0001>
module attributes {stable_mosaic.version = 11 : i64} {
  func.func private @main(%arg0: i32) attributes {dimension_semantics = [#tpu.dimension_semantics<core_parallel>], iteration_bounds = array<i64: 2>, tpu.core_type = #tpu.core_type<sc_scalar_subcore>, window_params = []} {
    return
  }
}

module attributes {stable_mosaic.version = 11 : i64} {
  func.func private @main(%arg0: i32) attributes {dimension_semantics = [#tpu.dimension_semantics<core_parallel>], iteration_bounds = array<i64: 2>, tpu.core_type = #tpu.core_type<sc_scalar_subcore>, window_params = []} {
    return
  }
}

module attributes {stable_mosaic.version = 11 : i64} {
  func.func @separator_mlp_kernel(%arg0: i32, %arg1: memref<256x32xbf16, #tpu.memory_space<vmem>>, %arg2: memref<32x64xbf16, #tpu.memory_space<vmem>>, %arg3: memref<1x64xf32, #tpu.memory_space<vmem>>, %arg4: memref<64x32xbf16, #tpu.memory_space<vmem>>, %arg5: memref<1x32xf32, #tpu.memory_space<vmem>>, %arg6: memref<256x32xf32, #tpu.memory_space<vmem>>, %arg7: memref<256x1xf32, #tpu.memory_space<vmem>>) attributes {dimension_semantics = [#tpu.dimension_semantics<parallel>], iteration_bounds = array<i64: 2>, scalar_prefetch = 0 : i64, scratch_operands = 0 : i64, tpu.core_type = #tpu.core_type<tc>, window_params = [{transform_indices = @transform_0, window_bounds = array<i64: 256, 32>}, {pipeline_mode = #tpu.pipeline_mode<synchronous>, transform_indices = @transform_1, window_bounds = array<i64: 32, 64>}, {pipeline_mode = #tpu.pipeline_mode<synchronous>, transform_indices = @transform_2, window_bounds = array<i64: 1, 64>}, {pipeline_mode = #tpu.pipeline_mode<synchronous>, transform_indices = @transform_3, window_bounds = array<i64: 64, 32>}, {pipeline_mode = #tpu.pipeline_mode<synchronous>, transform_indices = @transform_4, window_bounds = array<i64: 1, 32>}, {transform_indices = @transform_5, window_bounds = array<i64: 256, 32>}, {transform_indices = @transform_6, window_bounds = array<i64: 256, 1>}]} {
    %c0 = arith.constant 0 : index
    %c0_0 = arith.constant 0 : index
    %0 = vector.load %arg1[%c0, %c0_0] : memref<256x32xbf16, #tpu.memory_space<vmem>>, vector<256x32xbf16>
    %c0_1 = arith.constant 0 : index
    %c0_2 = arith.constant 0 : index
    %1 = vector.load %arg2[%c0_1, %c0_2] : memref<32x64xbf16, #tpu.memory_space<vmem>>, vector<32x64xbf16>
    %cst = arith.constant dense<0.000000e+00> : vector<256x64xf32>
    %2 = tpu.matmul %0, %1, %cst {dimension_numbers = #tpu.dot_dimension_numbers<[1], [0], [0], [1], [0, 0, 1, 1], [], []>} : vector<256x32xbf16>, vector<32x64xbf16>, vector<256x64xf32> -> vector<256x64xf32>
    %c0_3 = arith.constant 0 : index
    %c0_4 = arith.constant 0 : index
    %3 = vector.load %arg3[%c0_3, %c0_4] : memref<1x64xf32, #tpu.memory_space<vmem>>, vector<1x64xf32>
    %4 = vector.broadcast %3 : vector<1x64xf32> to vector<256x64xf32>
    %5 = arith.addf %2, %4 : vector<256x64xf32>
    %cst_5 = arith.constant 0.000000e+00 : f32
    %6 = vector.broadcast %cst_5 : f32 to vector<256x64xf32>
    %7 = arith.maximumf %5, %6 : vector<256x64xf32>
    %8 = arith.truncf %7 : vector<256x64xf32> to vector<256x64xbf16>
    %c0_6 = arith.constant 0 : index
    %c0_7 = arith.constant 0 : index
    %9 = vector.load %arg4[%c0_6, %c0_7] : memref<64x32xbf16, #tpu.memory_space<vmem>>, vector<64x32xbf16>
    %cst_8 = arith.constant dense<0.000000e+00> : vector<256x32xf32>
    %10 = tpu.matmul %8, %9, %cst_8 {dimension_numbers = #tpu.dot_dimension_numbers<[1], [0], [0], [1], [0, 0, 1, 1], [], []>} : vector<256x64xbf16>, vector<64x32xbf16>, vector<256x32xf32> -> vector<256x32xf32>
    %c0_9 = arith.constant 0 : index
    %c0_10 = arith.constant 0 : index
    %11 = vector.load %arg5[%c0_9, %c0_10] : memref<1x32xf32, #tpu.memory_space<vmem>>, vector<1x32xf32>
    %12 = vector.broadcast %11 : vector<1x32xf32> to vector<256x32xf32>
    %13 = arith.addf %10, %12 : vector<256x32xf32>
    %14 = arith.negf %13 : vector<256x32xf32>
    %15 = math.exp %14 : vector<256x32xf32>
    %cst_11 = arith.constant 1.000000e+00 : f32
    %16 = vector.broadcast %cst_11 : f32 to vector<256x32xf32>
    %17 = arith.addf %16, %15 : vector<256x32xf32>
    %18 = arith.divf %16, %17 : vector<256x32xf32>
    %c0_12 = arith.constant 0 : index
    %c0_13 = arith.constant 0 : index
    %19 = vector.load %arg6[%c0_12, %c0_13] : memref<256x32xf32, #tpu.memory_space<vmem>>, vector<256x32xf32>
    tpu.vector_store %arg6[%c0_12, %c0_13], %18 {strides = array<i32>} : memref<256x32xf32, #tpu.memory_space<vmem>>, vector<256x32xf32>,
    %cst_14 = arith.constant dense<0.000000e+00> : vector<256xf32>
    %20 = vector.multi_reduction <add>, %18, %cst_14 [1] : vector<256x32xf32> to vector<256xf32>
    %21 = vector.shape_cast %20 : vector<256xf32> to vector<256x1xf32>
    %cst_15 = arith.constant 3.125000e-02 : f32
    %22 = vector.broadcast %cst_15 : f32 to vector<256x1xf32>
    %23 = arith.mulf %21, %22 : vector<256x1xf32>
    %c0_16 = arith.constant 0 : index
    %c0_17 = arith.constant 0 : index
    %24 = vector.load %arg7[%c0_16, %c0_17] : memref<256x1xf32, #tpu.memory_space<vmem>>, vector<256x1xf32>
    tpu.vector_store %arg7[%c0_16, %c0_17], %23 {strides = array<i32>} : memref<256x1xf32, #tpu.memory_space<vmem>>, vector<256x1xf32>,
    return
  }
  func.func @transform_0(%arg0: i32) -> (i32, i32) {
    %c0_i32 = arith.constant 0 : i32
    %c0_i32_0 = arith.constant 0 : i32
    return %arg0, %c0_i32 : i32, i32
  }
  func.func @transform_1(%arg0: i32) -> (i32, i32) {
    %c0_i32 = arith.constant 0 : i32
    %c0_i32_0 = arith.constant 0 : i32
    %c0_i32_1 = arith.constant 0 : i32
    return %c0_i32, %c0_i32_0 : i32, i32
  }
  func.func @transform_2(%arg0: i32) -> (i32, i32) {
    %c0_i32 = arith.constant 0 : i32
    %c0_i32_0 = arith.constant 0 : i32
    %c0_i32_1 = arith.constant 0 : i32
    return %c0_i32, %c0_i32_0 : i32, i32
  }
  func.func @transform_3(%arg0: i32) -> (i32, i32) {
    %c0_i32 = arith.constant 0 : i32
    %c0_i32_0 = arith.constant 0 : i32
    %c0_i32_1 = arith.constant 0 : i32
    return %c0_i32, %c0_i32_0 : i32, i32
  }
  func.func @transform_4(%arg0: i32) -> (i32, i32) {
    %c0_i32 = arith.constant 0 : i32
    %c0_i32_0 = arith.constant 0 : i32
    %c0_i32_1 = arith.constant 0 : i32
    return %c0_i32, %c0_i32_0 : i32, i32
  }
  func.func @transform_5(%arg0: i32) -> (i32, i32) {
    %c0_i32 = arith.constant 0 : i32
    %c0_i32_0 = arith.constant 0 : i32
    return %arg0, %c0_i32 : i32, i32
  }
  func.func @transform_6(%arg0: i32) -> (i32, i32) {
    %c0_i32 = arith.constant 0 : i32
    %c0_i32_0 = arith.constant 0 : i32
    return %arg0, %c0_i32 : i32, i32
  }
}

</mosaic_0001>

<bundles_post_ra>
// kernel: separator_forward.1
= control target key start
LH: loop header
LB: loop body
LE: loop exit
PB: predicated region body
PF: predicated region fallthrough
CT: control target
= control target key end

     0   :  { %s1803_s21 = smov 0   ;;  %s2137_s0 = inlined_call_operand.vmem [shape: bf16[512,32], index: 0, kind: input, shape index: {}]   ;;  %s2138_s1 = inlined_call_operand.vmem [shape: bf16[32,64], index: 1, kind: input, shape index: {}]   ;;  %s2139_s2 = inlined_call_operand.vmem [shape: f32[1,64], index: 2, kind: input, shape index: {}]   ;;  %s2140_s3 = inlined_call_operand.vmem [shape: bf16[64,32], index: 3, kind: input, shape index: {}]   ;;  %s2141_s4 = inlined_call_operand.vmem [shape: f32[1,32], index: 4, kind: input, shape index: {}]   ;;  %s2142_s5 = inlined_call_operand.vmem [shape: f32[512,32], index: 5, kind: output, shape index: {0}]   ;;  %s2143_s6 = inlined_call_operand.vmem [shape: f32[512,1], index: 6, kind: output, shape index: {1}]  }
   0x1 LB: > { %s1387_s22 = sadd.s32 4294967295, %s1766_s21   ;;  %p1391_p0 = scmp.ge.s32.totalorder %s1766_s21, 1  ;;  %s1766_s21 = sphi %s1803_s21, %s17_s21  }
   0x2   : > { %p216_p1 = scmp.lt.s32.totalorder %s1766_s21, 3 }
   0x4   : > { %p217_p2 = pnand %p1391_p0, %p216_p1 }
   0x5   : > { %v1610_v0 = vld [vmem:[%s2138_s1] sm:$0xff] (!%p217_p2)   ;;  %s1392_s25 = sshll.u32 (!%p217_p2), %s1387_s22, 5  ;;  %v1611_v1 = vld [vmem:[%s2138_s1 + $0x8] sm:$0xff] (!%p217_p2)   ;;  %vm405_vm0 = vcmask (!%p217_p2), 261120   ;;  %v1630_v20 = vld [vmem:[%s2140_s3 + $0x10] sm:$0xff] (!%p217_p2)   ;;  %vm702_vm1 = vcmask (!%p217_p2), 523264  }
   0x6   : > { %220 = sbr.rel (%p217_p2) target bundleno = 692 (0x2b4), region = 40  ;;  %p252_p3 = scmp.lt.s32.totalorder (!%p217_p2), %s1392_s25, 63  ;;  %1526 = vmatprep.subr.bf16.mxu0 (!%p217_p2), %v1610_v0  ;;  %v1628_v2 = vld [vmem:[%s2140_s3] sm:$0xff] (!%p217_p2)   ;;  %v1629_v3 = vld [vmem:[%s2140_s3 + $0x8] sm:$0xff] (!%p217_p2)   ;;  %v1631_v21 = vld [vmem:[%s2140_s3 + $0x18] sm:$0xff] (!%p217_p2)   ;;  %vm1264_vm2 = vcmask (!%p217_p2), 7168  }
   0x7   : > { %1527 = vmatpush3.bf16.msra.mxu0 (!%p217_p2), %v1610_v0  ;;  %1562 = vmatprep.subr.bf16.mxu1 (!%p217_p2), %v1628_v2  ;;  %v1872_v22 = vld [vmem:[%s2139_s2] ss:$0 sm:$0xff] (!%p217_p2) }
   0x8   : > { %1528 = vmatprep.subr.bf16.mxu0 (!%p217_p2), %v1611_v1  ;;  %1563 = vmatpush3.bf16.msra.mxu1 (!%p217_p2), %v1628_v2 }
   0x9   : > { %1564 = vmatprep.subr.bf16.mxu1 (!%p217_p2), %v1629_v3 }
   0xb   : > { %1529 = vmatpush3.bf16.msra.mxu0 (!%p217_p2), %v1611_v1 }
   0xc   : > { %1565 = vmatpush3.bf16.msra.mxu1 (!%p217_p2), %v1629_v3 }
   0xd   : > { %s2145_s25 = smov (!%p252_p3, %s1392_s25), 63  ;;  %1566 = vmatprep.subr.bf16.mxu1 %v1630_v20 }
   0xe   : > { %s1393_s8 = sshll.u32 %s2145_s25, 2  ;;  %s1395_s20 = sshll.u32 %s2145_s25, 3 }
   0xf   : > { %s1829_s11 = scalar_lea.vmem %s2137_s0, %s1393_s8  ;;  %s1946_s24 = scalar_lea.vmem %s2142_s5, %s1395_s20 }
  0x10   : > { %v1612_v4 = vld [vmem:[%s1829_s11] sm:$0xff]   ;;  %v1613_v5 = vld [vmem:[%s1829_s11 + $0x8] sm:$0xff]   ;;  %v1614_v6 = vld [vmem:[%s1829_s11 + $0x10] sm:$0xff]   ;;  %1567 = vmatpush3.bf16.msra.mxu1 %v1630_v20  ;;  %s2068_s28 = scalar_lea.vmem %s2143_s6, %s1395_s20 }
  0x11   : > { %1530 = vmatprep.mubr.msk.bf16.mxu0 %vm405_vm0, %v1612_v4  ;;  %v1615_v7 = vld [vmem:[%s1829_s11 + $0x18] sm:$0xff]   ;;  %v1616_v8 = vld [vmem:[%s1829_s11 + $0x20] sm:$0xff]   ;;  %v1617_v9 = vld [vmem:[%s1829_s11 + $0x28] sm:$0xff]   ;;  %1568 = vmatprep.subr.bf16.mxu1 %v1631_v21 }
  0x12   : > { %1531 = vmatmul.mubr.msk.bf16.vlgmr.msra.gmra.mrb[0].mxu0 %vm405_vm0, %v1613_v5  ;;  %v1618_v10 = vld [vmem:[%s1829_s11 + $0x30] sm:$0xff]   ;;  %v1619_v11 = vld [vmem:[%s1829_s11 + $0x38] sm:$0xff]   ;;  %v1620_v12 = vld [vmem:[%s1829_s11 + $0x40] sm:$0xff]  }
  0x13   : > { %1534 = vmatprep.mubr.msk.bf16.mxu0 %vm405_vm0, %v1614_v6  ;;  %v1621_v13 = vld [vmem:[%s1829_s11 + $0x48] sm:$0xff]   ;;  %v1622_v14 = vld [vmem:[%s1829_s11 + $0x50] sm:$0xff]   ;;  %v1623_v15 = vld [vmem:[%s1829_s11 + $0x58] sm:$0xff]  }
  0x14   : > { %v1624_v16 = vld [vmem:[%s1829_s11 + $0x60] sm:$0xff]   ;;  %v1625_v17 = vld [vmem:[%s1829_s11 + $0x68] sm:$0xff]   ;;  %v1626_v18 = vld [vmem:[%s1829_s11 + $0x70] sm:$0xff]   ;;  %1569 = vmatpush3.bf16.msra.mxu1 %v1631_v21 }
  0x15   : > { %v1627_v19 = vld [vmem:[%s1829_s11 + $0x78] sm:$0xff]  }
  0x1a   : > { %1535 = vmatmul.mubr.msk.bf16.gmra.mrb[4].mxu0 %vm405_vm0, %v1615_v7 }
  0x1b   : > { %1538 = vmatprep.mubr.msk.bf16.mxu0 %vm405_vm0, %v1616_v8 }
  0x22   : > { %1539 = vmatmul.mubr.msk.bf16.gmra.mrb[8].mxu0 %vm405_vm0, %v1617_v9 }
  0x23   : > { %1542 = vmatprep.mubr.msk.bf16.mxu0 %vm405_vm0, %v1618_v10 }
  0x2a   : > { %1543 = vmatmul.mubr.msk.bf16.gmra.mrb[12].mxu0 %vm405_vm0, %v1619_v11 }
  0x2b   : > { %1546 = vmatprep.mubr.msk.bf16.mxu0 %vm405_vm0, %v1620_v12 }
  0x32   : > { %1547 = vmatmul.mubr.msk.bf16.gmra.mrb[16].mxu0 %vm405_vm0, %v1621_v13 }
  0x33   : > { %1550 = vmatprep.mubr.msk.bf16.mxu0 %vm405_vm0, %v1622_v14 }
  0x3a   : > { %1551 = vmatmul.mubr.msk.bf16.gmra.mrb[20].mxu0 %vm405_vm0, %v1623_v15 }
  0x3b   : > { %1554 = vmatprep.mubr.msk.bf16.mxu0 %vm405_vm0, %v1624_v16 }
  0x42   : > { %1555 = vmatmul.mubr.msk.bf16.gmra.mrb[24].mxu0 %vm405_vm0, %v1625_v17 }
  0x43   : > { %1558 = vmatprep.mubr.msk.bf16.mxu0 %vm405_vm0, %v1626_v18 }
  0x4a   : > { %1559 = vmatmul.mubr.msk.bf16.gmra.mrb[28].mxu0 %vm405_vm0, %v1627_v19 }
  0xe5   : > { %v1532_v23 = vpop.f32.mrb[0].mxu0 }
  0xe6   : > { %v497_v24 = vadd.f32 %v1532_v23, %v1872_v22  ;;  %v488_v25 = vpop.f32.mrb[1].mxu0 }
  0xe7   : > { %v489_v26 = vadd.f32 %v1872_v22, %v488_v25  ;;  %v1533_v27 = vpop.f32.mrb[2].mxu0 }
  0xe8   : > { %v500_v28 = vadd.f32 %v1533_v27, %v1872_v22  ;;  %v491_v29 = vpop.f32.mrb[3].mxu0  ;;  %v617_v31 = vmax.f32 %v497_v24, 0.0 }
  0xe9   : > { %v492_v30 = vadd.f32 %v1872_v22, %v491_v29  ;;  %v615_v33 = vmax.f32 %v489_v26, 0.0 }
  0xea   : > { %v618_v32 = vmax.f32 %v500_v28, 0.0 }
  0xeb   : > { %v616_v34 = vmax.f32 %v492_v30, 0.0 }
  0xec   : > { %v648_v35 = vpack.c.bf16 %v618_v32, %v617_v31 }
  0xed   : > { %v1536_v36 = vpop.f32.mrb[4].mxu0  ;;  %v647_v37 = vpack.c.bf16 %v616_v34, %v615_v33 }
  0xee   : > { %v513_v38 = vadd.f32 %v1536_v36, %v1872_v22  ;;  %v504_v39 = vpop.f32.mrb[5].mxu0 }
  0xef   : > { %v505_v40 = vadd.f32 %v1872_v22, %v504_v39  ;;  %v1537_v41 = vpop.f32.mrb[6].mxu0  ;;  %1570 = vmatprep.mubr.msk.bf16.mxu1 %vm702_vm1, %v647_v37 }
  0xf0   : > { %v516_v42 = vadd.f32 %v1537_v41, %v1872_v22  ;;  %v507_v43 = vpop.f32.mrb[7].mxu0  ;;  %1571 = vmatmul.mubr.msk.bf16.vlgmr.msra.gmra.mrb[0].mxu1 %vm702_vm1, %v648_v35  ;;  %v621_v45 = vmax.f32 %v513_v38, 0.0 }
  0xf1   : > { %v508_v44 = vadd.f32 %v1872_v22, %v507_v43  ;;  %v619_v47 = vmax.f32 %v505_v40, 0.0 }
  0xf2   : > { %v622_v46 = vmax.f32 %v516_v42, 0.0 }
  0xf3   : > { %v620_v48 = vmax.f32 %v508_v44, 0.0 }
  0xf4   : > { %v650_v49 = vpack.c.bf16 %v622_v46, %v621_v45 }
  0xf5   : > { %v649_v50 = vpack.c.bf16 %v620_v48, %v619_v47  ;;  %v1540_v51 = vpop.f32.mrb[8].mxu0 }
  0xf6   : > { %v529_v52 = vadd.f32 %v1540_v51, %v1872_v22  ;;  %v520_v53 = vpop.f32.mrb[9].mxu0 }
  0xf7   : > { %v521_v54 = vadd.f32 %v1872_v22, %v520_v53  ;;  %v1541_v55 = vpop.f32.mrb[10].mxu0  ;;  %1574 = vmatprep.mubr.msk.bf16.mxu1 %vm702_vm1, %v649_v50 }
  0xf8   : > { %v532_v56 = vadd.f32 %v1541_v55, %v1872_v22  ;;  %v523_v57 = vpop.f32.mrb[11].mxu0  ;;  %1575 = vmatmul.mubr.msk.bf16.gmra.mrb[4].mxu1 %vm702_vm1, %v650_v49  ;;  %v625_v59 = vmax.f32 %v529_v52, 0.0 }
  0xf9   : > { %v524_v58 = vadd.f32 %v1872_v22, %v523_v57  ;;  %v623_v61 = vmax.f32 %v521_v54, 0.0 }
  0xfa   : > { %v626_v60 = vmax.f32 %v532_v56, 0.0 }
  0xfb   : > { %v624_v62 = vmax.f32 %v524_v58, 0.0 }
  0xfc   : > { %v652_v63 = vpack.c.bf16 %v626_v60, %v625_v59 }
  0xfd   : > { %v651_v0 = vpack.c.bf16 %v624_v62, %v623_v61  ;;  %v1544_v1 = vpop.f32.mrb[12].mxu0 }
  0xfe   : > { %v545_v2 = vadd.f32 %v1544_v1, %v1872_v22  ;;  %v536_v3 = vpop.f32.mrb[13].mxu0 }
  0xff   : > { %v537_v4 = vadd.f32 %v1872_v22, %v536_v3  ;;  %v1545_v5 = vpop.f32.mrb[14].mxu0  ;;  %1578 = vmatprep.mubr.msk.bf16.mxu1 %vm702_vm1, %v651_v0 }
 0x100   : > { %v548_v6 = vadd.f32 %v1545_v5, %v1872_v22  ;;  %v539_v7 = vpop.f32.mrb[15].mxu0  ;;  %1579 = vmatmul.mubr.msk.bf16.gmra.mrb[8].mxu1 %vm702_vm1, %v652_v63  ;;  %v629_v9 = vmax.f32 %v545_v2, 0.0 }
 0x101   : > { %v540_v8 = vadd.f32 %v1872_v22, %v539_v7  ;;  %v627_v11 = vmax.f32 %v537_v4, 0.0 }
 0x102   : > { %v630_v10 = vmax.f32 %v548_v6, 0.0 }
 0x103   : > { %v628_v12 = vmax.f32 %v540_v8, 0.0  ;;  %v1925_v8 = vld [vmem:[%s2141_s4] ss:$0 sm:$0xff] }
 0x104   : > { %v654_v13 = vpack.c.bf16 %v630_v10, %v629_v9 }
 0x105   : > { %v653_v14 = vpack.c.bf16 %v628_v12, %v627_v11  ;;  %v1548_v15 = vpop.f32.mrb[16].mxu0 }
 0x106   : > { %v561_v16 = vadd.f32 %v1548_v15, %v1872_v22  ;;  %v552_v17 = vpop.f32.mrb[17].mxu0 }
 0x107   : > { %v553_v18 = vadd.f32 %v1872_v22, %v552_v17  ;;  %v1549_v19 = vpop.f32.mrb[18].mxu0  ;;  %1582 = vmatprep.mubr.msk.bf16.mxu1 %vm702_vm1, %v653_v14 }
 0x108   : > { %v564_v20 = vadd.f32 %v1549_v19, %v1872_v22  ;;  %v555_v21 = vpop.f32.mrb[19].mxu0  ;;  %1583 = vmatmul.mubr.msk.bf16.gmra.mrb[12].mxu1 %vm702_vm1, %v654_v13  ;;  %v633_v24 = vmax.f32 %v561_v16, 0.0 }
 0x109   : > { %v556_v23 = vadd.f32 %v1872_v22, %v555_v21  ;;  %v631_v26 = vmax.f32 %v553_v18, 0.0 }
 0x10a   : > { %v634_v25 = vmax.f32 %v564_v20, 0.0 }
 0x10b   : > { %v632_v27 = vmax.f32 %v556_v23, 0.0 }
 0x10c   : > { %v656_v28 = vpack.c.bf16 %v634_v25, %v633_v24 }
 0x10d   : > { %v655_v29 = vpack.c.bf16 %v632_v27, %v631_v26  ;;  %v1552_v30 = vpop.f32.mrb[20].mxu0 }
 0x10e   : > { %v577_v31 = vadd.f32 %v1552_v30, %v1872_v22  ;;  %v568_v32 = vpop.f32.mrb[21].mxu0 }
 0x10f   : > { %v569_v33 = vadd.f32 %v1872_v22, %v568_v32  ;;  %v1553_v34 = vpop.f32.mrb[22].mxu0  ;;  %1586 = vmatprep.mubr.msk.bf16.mxu1 %vm702_vm1, %v655_v29 }
 0x110   : > { %v580_v35 = vadd.f32 %v1553_v34, %v1872_v22  ;;  %v571_v36 = vpop.f32.mrb[23].mxu0  ;;  %1587 = vmatmul.mubr.msk.bf16.gmra.mrb[16].mxu1 %vm702_vm1, %v656_v28  ;;  %v637_v38 = vmax.f32 %v577_v31, 0.0 }
 0x111   : > { %v572_v37 = vadd.f32 %v1872_v22, %v571_v36  ;;  %v635_v40 = vmax.f32 %v569_v33, 0.0 }
 0x112   : > { %v638_v39 = vmax.f32 %v580_v35, 0.0 }
 0x113   : > { %v636_v41 = vmax.f32 %v572_v37, 0.0 }
 0x114   : > { %v658_v42 = vpack.c.bf16 %v638_v39, %v637_v38 }
 0x115   : > { %v657_v43 = vpack.c.bf16 %v636_v41, %v635_v40  ;;  %v1556_v44 = vpop.f32.mrb[24].mxu0 }
 0x116   : > { %v593_v45 = vadd.f32 %v1556_v44, %v1872_v22  ;;  %v584_v46 = vpop.f32.mrb[25].mxu0 }
 0x117   : > { %v585_v47 = vadd.f32 %v1872_v22, %v584_v46  ;;  %v1557_v48 = vpop.f32.mrb[26].mxu0  ;;  %1590 = vmatprep.mubr.msk.bf16.mxu1 %vm702_vm1, %v657_v43 }
 0x118   : > { %v596_v49 = vadd.f32 %v1557_v48, %v1872_v22  ;;  %v587_v50 = vpop.f32.mrb[27].mxu0  ;;  %1591 = vmatmul.mubr.msk.bf16.gmra.mrb[20].mxu1 %vm702_vm1, %v658_v42  ;;  %v641_v52 = vmax.f32 %v593_v45, 0.0 }
 0x119   : > { %v588_v51 = vadd.f32 %v1872_v22, %v587_v50  ;;  %v639_v54 = vmax.f32 %v585_v47, 0.0 }
 0x11a   : > { %v642_v53 = vmax.f32 %v596_v49, 0.0 }
 0x11b   : > { %v640_v55 = vmax.f32 %v588_v51, 0.0 }
 0x11c   : > { %v660_v56 = vpack.c.bf16 %v642_v53, %v641_v52 }
 0x11d   : > { %v659_v57 = vpack.c.bf16 %v640_v55, %v639_v54  ;;  %v1560_v58 = vpop.f32.mrb[28].mxu0 }
 0x11e   : > { %v609_v59 = vadd.f32 %v1560_v58, %v1872_v22  ;;  %v600_v60 = vpop.f32.mrb[29].mxu0 }
 0x11f   : > { %v601_v61 = vadd.f32 %v1872_v22, %v600_v60  ;;  %v1561_v62 = vpop.f32.mrb[30].mxu0  ;;  %1594 = vmatprep.mubr.msk.bf16.mxu1 %vm702_vm1, %v659_v57 }
 0x120   : > { %v612_v63 = vadd.f32 %v1561_v62, %v1872_v22  ;;  %v603_v0 = vpop.f32.mrb[31].mxu0  ;;  %1595 = vmatmul.mubr.msk.bf16.gmra.mrb[24].mxu1 %vm702_vm1, %v660_v56  ;;  %v645_v2 = vmax.f32 %v609_v59, 0.0 }
 0x121   : > { %v604_v1 = vadd.f32 %v1872_v22, %v603_v0  ;;  %v643_v4 = vmax.f32 %v601_v61, 0.0 }
 0x122   : > { %v646_v3 = vmax.f32 %v612_v63, 0.0 }
 0x123   : > { %v644_v5 = vmax.f32 %v604_v1, 0.0 }
 0x124   : > { %v662_v6 = vpack.c.bf16 %v646_v3, %v645_v2 }
 0x125   : > { %v661_v7 = vpack.c.bf16 %v644_v5, %v643_v4 }
 0x127   : > { %1598 = vmatprep.mubr.msk.bf16.mxu1 %vm702_vm1, %v661_v7 }
 0x128   : > { %1599 = vmatmul.mubr.msk.bf16.gmra.mrb[28].mxu1 %vm702_vm1, %v662_v6 }
 0x1c3   : > { %v1572_v9 = vpop.f32.mrb[0].mxu1 }
 0x1c4   : > { %v794_v10 = vadd.f32 %v1572_v9, %v1925_v8  ;;  %v785_v11 = vpop.f32.mrb[1].mxu1 }
 0x1c5   : > { %v786_v22 = vadd.f32 %v1925_v8, %v785_v11  ;;  %v1573_v12 = vpop.f32.mrb[2].mxu1 }
 0x1c6   : > { %v1456_v13 = vmul.f32 -1.442695, %v794_v10  ;;  %v797_v14 = vadd.f32 %v1573_v12, %v1925_v8  ;;  %v788_v15 = vpop.f32.mrb[3].mxu1 }
 0x1c7   : > { %v1454_v16 = vmul.f32 -1.442695, %v786_v22  ;;  %v789_v17 = vadd.f32 %v1925_v8, %v788_v15 }
 0x1c8   : > { %1632 = vpow2.f32 %v1456_v13  ;;  %v1457_v18 = vmul.f32 -1.442695, %v797_v14 }
 0x1c9   : > { %1634 = vpow2.f32 %v1454_v16  ;;  %v1455_v19 = vmul.f32 -1.442695, %v789_v17 }
 0x1ca   : > { %1636 = vpow2.f32 %v1457_v18 }
 0x1cb   : > { %1638 = vpow2.f32 %v1455_v19  ;;  %v1576_v20 = vpop.f32.mrb[4].mxu1 }
 0x1cc   : > { %v810_v21 = vadd.f32 %v1576_v20, %v1925_v8  ;;  %v801_v23 = vpop.f32.mrb[5].mxu1 }
 0x1cd   : > { %v802_v24 = vadd.f32 %v1925_v8, %v801_v23  ;;  %v1577_v25 = vpop.f32.mrb[6].mxu1 }
 0x1ce   : > { %v1460_v26 = vmul.f32 -1.442695, %v810_v21  ;;  %v813_v27 = vadd.f32 %v1577_v25, %v1925_v8  ;;  %v804_v28 = vpop.f32.mrb[7].mxu1 }
 0x1cf   : > { %v1458_v29 = vmul.f32 -1.442695, %v802_v24  ;;  %v805_v30 = vadd.f32 %v1925_v8, %v804_v28 }
 0x1d0   : > { %1640 = vpow2.f32 %v1460_v26  ;;  %v1461_v31 = vmul.f32 -1.442695, %v813_v27 }
 0x1d1   : > { %1642 = vpow2.f32 %v1458_v29  ;;  %v1459_v32 = vmul.f32 -1.442695, %v805_v30 }
 0x1d2   : > { %v1633_v33 = vpop.eup %1632  ;;  %1644 = vpow2.f32 %v1461_v31 }
 0x1d3   : > { %v1635_v34 = vpop.eup %1634  ;;  %v1010_v35 = vadd.f32 1.0, %v1633_v33  ;;  %1646 = vpow2.f32 %v1459_v32  ;;  %v1580_v36 = vpop.f32.mrb[8].mxu1 }
 0x1d4   : > { %v1637_v37 = vpop.eup %1636  ;;  %v1008_v38 = vadd.f32 1.0, %v1635_v34  ;;  %v826_v39 = vadd.f32 %v1580_v36, %v1925_v8  ;;  %v817_v40 = vpop.f32.mrb[9].mxu1 }
 0x1d5   : > { %v1639_v41 = vpop.eup %1638  ;;  %1648 = vrcp.f32 %v1010_v35  ;;  %v1011_v42 = vadd.f32 1.0, %v1637_v37  ;;  %v818_v43 = vadd.f32 %v1925_v8, %v817_v40  ;;  %v1581_v44 = vpop.f32.mrb[10].mxu1 }
 0x1d6   : > { %1650 = vrcp.f32 %v1008_v38  ;;  %v1009_v45 = vadd.f32 1.0, %v1639_v41  ;;  %v1464_v46 = vmul.f32 -1.442695, %v826_v39  ;;  %v829_v47 = vadd.f32 %v1581_v44, %v1925_v8  ;;  %v820_v48 = vpop.f32.mrb[11].mxu1 }
 0x1d7   : > { %1652 = vrcp.f32 %v1011_v42  ;;  %v1462_v49 = vmul.f32 -1.442695, %v818_v43  ;;  %v821_v50 = vadd.f32 %v1925_v8, %v820_v48 }
 0x1d8   : > { %1654 = vrcp.f32 %v1009_v45  ;;  %v1465_v51 = vmul.f32 -1.442695, %v829_v47 }
 0x1d9   : > { %1656 = vpow2.f32 %v1464_v46  ;;  %v1463_v52 = vmul.f32 -1.442695, %v821_v50 }
 0x1da   : > { %v1641_v53 = vpop.eup %1640  ;;  %1658 = vpow2.f32 %v1462_v49 }
 0x1db   : > { %v1643_v54 = vpop.eup %1642  ;;  %v1014_v55 = vadd.f32 1.0, %v1641_v53  ;;  %1660 = vpow2.f32 %v1465_v51  ;;  %v1584_v56 = vpop.f32.mrb[12].mxu1 }
 0x1dc   : > { %v1645_v57 = vpop.eup %1644  ;;  %v1012_v58 = vadd.f32 1.0, %v1643_v54  ;;  %1662 = vpow2.f32 %v1463_v52  ;;  %v842_v59 = vadd.f32 %v1584_v56, %v1925_v8  ;;  %v833_v60 = vpop.f32.mrb[13].mxu1 }
 0x1dd   : > { %v1647_v61 = vpop.eup %1646  ;;  %1664 = vrcp.f32 %v1014_v55  ;;  %v1015_v62 = vadd.f32 1.0, %v1645_v57  ;;  %v834_v63 = vadd.f32 %v1925_v8, %v833_v60  ;;  %v1585_v0 = vpop.f32.mrb[14].mxu1 }
 0x1de   : > { %1666 = vrcp.f32 %v1012_v58  ;;  %v1013_v1 = vadd.f32 1.0, %v1647_v61  ;;  %v1468_v2 = vmul.f32 -1.442695, %v842_v59  ;;  %v845_v3 = vadd.f32 %v1585_v0, %v1925_v8  ;;  %v836_v4 = vpop.f32.mrb[15].mxu1 }
 0x1df   : > { %v1649_v5 = vpop.eup %1648  ;;  %1668 = vrcp.f32 %v1015_v62  ;;  %v1466_v6 = vmul.f32 -1.442695, %v834_v63  ;;  %v837_v7 = vadd.f32 %v1925_v8, %v836_v4 }
 0x1e0   : > { %v1651_v9 = vpop.eup %1650  ;;  %1106 = vst.msk [vmem:[%s1946_s24 + $0x10] sm:$0xff] %vm405_vm0, %v1649_v5  ;;  %1670 = vrcp.f32 %v1013_v1  ;;  %v1469_v10 = vmul.f32 -1.442695, %v845_v3  ;;  %v1142_v11 = vsel %vm405_vm0, %v1649_v5, 0.0 }
 0x1e1   : > { %v1653_v22 = vpop.eup %1652  ;;  %1104 = vst.msk [vmem:[%s1946_s24] sm:$0xff] %vm405_vm0, %v1651_v9  ;;  %1672 = vpow2.f32 %v1468_v2  ;;  %v1467_v12 = vmul.f32 -1.442695, %v837_v7  ;;  %1143 = vadd.xlane.f32.xlu1 %v1142_v11  ;;  %v1136_v13 = vsel %vm405_vm0, %v1651_v9, 0.0 }
 0x1e2   : > { %v1655_v14 = vpop.eup %1654  ;;  %1107 = vst.msk [vmem:[%s1946_s24 + $0x18] sm:$0xff] %vm405_vm0, %v1653_v22  ;;  %1674 = vpow2.f32 %v1466_v6  ;;  %1137 = vadd.xlane.f32.xlu0 %v1136_v13  ;;  %v1145_v21 = vsel %vm405_vm0, %v1653_v22, 0.0 }
 0x1e3   : > { %v1657_v15 = vpop.eup %1656  ;;  %1105 = vst.msk [vmem:[%s1946_s24 + $0x8] sm:$0xff] %vm405_vm0, %v1655_v14  ;;  %1676 = vpow2.f32 %v1469_v10  ;;  %v1588_v16 = vpop.f32.mrb[16].mxu1  ;;  %v1139_v27 = vsel %vm405_vm0, %v1655_v14, 0.0 }
 0x1e4   : > { %v1659_v17 = vpop.eup %1658  ;;  %v1018_v18 = vadd.f32 1.0, %v1657_v15  ;;  %1678 = vpow2.f32 %v1467_v12  ;;  %v858_v19 = vadd.f32 %v1588_v16, %v1925_v8  ;;  %v849_v20 = vpop.f32.mrb[17].mxu1 }
 0x1e5   : > { %v1661_v23 = vpop.eup %1660  ;;  %v1016_v24 = vadd.f32 1.0, %v1659_v17  ;;  %v850_v25 = vadd.f32 %v1925_v8, %v849_v20  ;;  %1146 = vadd.xlane.f32.xlu1 %v1145_v21  ;;  %v1589_v26 = vpop.f32.mrb[18].mxu1 }
 0x1e6   : > { %v1663_v28 = vpop.eup %1662  ;;  %1680 = vrcp.f32 %v1018_v18  ;;  %v1019_v29 = vadd.f32 1.0, %v1661_v23  ;;  %v1472_v30 = vmul.f32 -1.442695, %v858_v19  ;;  %v861_v31 = vadd.f32 %v1589_v26, %v1925_v8  ;;  %v852_v32 = vpop.f32.mrb[19].mxu1  ;;  %1140 = vadd.xlane.f32.xlu0 %v1139_v27 }
 0x1e7   : > { %v1665_v33 = vpop.eup %1664  ;;  %1682 = vrcp.f32 %v1016_v24  ;;  %v1017_v34 = vadd.f32 1.0, %v1663_v28  ;;  %v1470_v35 = vmul.f32 -1.442695, %v850_v25  ;;  %v853_v36 = vadd.f32 %v1925_v8, %v852_v32 }
 0x1e8   : > { %v1667_v37 = vpop.eup %1666  ;;  %1110 = vst.msk [vmem:[%s1946_s24 + $0x30] sm:$0xff] %vm405_vm0, %v1665_v33  ;;  %1684 = vrcp.f32 %v1019_v29  ;;  %v1473_v38 = vmul.f32 -1.442695, %v861_v31  ;;  %v1154_v39 = vsel %vm405_vm0, %v1665_v33, 0.0 }
 0x1e9   : > { %v1669_v40 = vpop.eup %1668  ;;  %1108 = vst.msk [vmem:[%s1946_s24 + $0x20] sm:$0xff] %vm405_vm0, %v1667_v37  ;;  %1686 = vrcp.f32 %v1017_v34  ;;  %v1471_v41 = vmul.f32 -1.442695, %v853_v36  ;;  %v1148_v50 = vsel %vm405_vm0, %v1667_v37, 0.0 }
 0x1ea   : > { %v1671_v42 = vpop.eup %1670  ;;  %1111 = vst.msk [vmem:[%s1946_s24 + $0x38] sm:$0xff] %vm405_vm0, %v1669_v40  ;;  %1688 = vpow2.f32 %v1472_v30  ;;  %1155 = vadd.xlane.f32.xlu0 %v1154_v39  ;;  %v1157_v43 = vsel %vm405_vm0, %v1669_v40, 0.0 }
 0x1eb   : > { %v1673_v44 = vpop.eup %1672  ;;  %1109 = vst.msk [vmem:[%s1946_s24 + $0x28] sm:$0xff] %vm405_vm0, %v1671_v42  ;;  %1690 = vpow2.f32 %v1470_v35  ;;  %1158 = vadd.xlane.f32.xlu1 %v1157_v43  ;;  %v1592_v45 = vpop.f32.mrb[20].mxu1  ;;  %v1151_v55 = vsel %vm405_vm0, %v1671_v42, 0.0 }
 0x1ec   : > { %v1675_v46 = vpop.eup %1674  ;;  %v1022_v47 = vadd.f32 1.0, %v1673_v44  ;;  %1692 = vpow2.f32 %v1473_v38  ;;  %v874_v48 = vadd.f32 %v1592_v45, %v1925_v8  ;;  %v865_v49 = vpop.f32.mrb[21].mxu1 }
 0x1ed   : > { %v1677_v51 = vpop.eup %1676  ;;  %v1020_v52 = vadd.f32 1.0, %v1675_v46  ;;  %1694 = vpow2.f32 %v1471_v41  ;;  %v866_v53 = vadd.f32 %v1925_v8, %v865_v49  ;;  %v1593_v54 = vpop.f32.mrb[22].mxu1 }
 0x1ee   : > { %v1679_v56 = vpop.eup %1678  ;;  %1696 = vrcp.f32 %v1022_v47  ;;  %v1023_v57 = vadd.f32 1.0, %v1677_v51  ;;  %v1476_v58 = vmul.f32 -1.442695, %v874_v48  ;;  %v877_v59 = vadd.f32 %v1593_v54, %v1925_v8  ;;  %v868_v60 = vpop.f32.mrb[23].mxu1  ;;  %1149 = vadd.xlane.f32.xlu0 %v1148_v50 }
 0x1ef   : > { %1698 = vrcp.f32 %v1020_v52  ;;  %v1021_v61 = vadd.f32 1.0, %v1679_v56  ;;  %v1474_v62 = vmul.f32 -1.442695, %v866_v53  ;;  %v869_v63 = vadd.f32 %v1925_v8, %v868_v60  ;;  %1152 = vadd.xlane.f32.xlu1 %v1151_v55 }
 0x1f0   : > { %v1681_v0 = vpop.eup %1680  ;;  %1700 = vrcp.f32 %v1023_v57  ;;  %v1477_v1 = vmul.f32 -1.442695, %v877_v59 }
 0x1f1   : > { %v1683_v2 = vpop.eup %1682  ;;  %1114 = vst.msk [vmem:[%s1946_s24 + $0x50] sm:$0xff] %vm405_vm0, %v1681_v0  ;;  %1702 = vrcp.f32 %v1021_v61  ;;  %v1475_v3 = vmul.f32 -1.442695, %v869_v63  ;;  %v1166_v4 = vsel %vm405_vm0, %v1681_v0, 0.0 }
 0x1f2   : > { %v1685_v5 = vpop.eup %1684  ;;  %1112 = vst.msk [vmem:[%s1946_s24 + $0x40] sm:$0xff] %vm405_vm0, %v1683_v2  ;;  %1704 = vpow2.f32 %v1476_v58  ;;  %1167 = vadd.xlane.f32.xlu0 %v1166_v4  ;;  %v1160_v16 = vsel %vm405_vm0, %v1683_v2, 0.0 }
 0x1f3   : > { %v1687_v6 = vpop.eup %1686  ;;  %1115 = vst.msk [vmem:[%s1946_s24 + $0x58] sm:$0xff] %vm405_vm0, %v1685_v5  ;;  %1706 = vpow2.f32 %v1474_v62  ;;  %v1596_v7 = vpop.f32.mrb[24].mxu1  ;;  %v1169_v9 = vsel %vm405_vm0, %v1685_v5, 0.0 }
 0x1f4   : > { %v1689_v10 = vpop.eup %1688  ;;  %1113 = vst.msk [vmem:[%s1946_s24 + $0x48] sm:$0xff] %vm405_vm0, %v1687_v6  ;;  %1708 = vpow2.f32 %v1477_v1  ;;  %v890_v11 = vadd.f32 %v1596_v7, %v1925_v8  ;;  %1170 = vadd.xlane.f32.xlu1 %v1169_v9  ;;  %v881_v22 = vpop.f32.mrb[25].mxu1  ;;  %v1163_v21 = vsel %vm405_vm0, %v1687_v6, 0.0 }
 0x1f5   : > { %v1691_v12 = vpop.eup %1690  ;;  %v1026_v13 = vadd.f32 1.0, %v1689_v10  ;;  %1710 = vpow2.f32 %v1475_v3  ;;  %v882_v14 = vadd.f32 %v1925_v8, %v881_v22  ;;  %v1597_v15 = vpop.f32.mrb[26].mxu1 }
 0x1f6   : > { %v1693_v17 = vpop.eup %1692  ;;  %v1024_v18 = vadd.f32 1.0, %v1691_v12  ;;  %v893_v19 = vadd.f32 %v1597_v15, %v1925_v8  ;;  %v884_v20 = vpop.f32.mrb[27].mxu1  ;;  %1161 = vadd.xlane.f32.xlu0 %v1160_v16  ;;  %v1480_v25 = vmul.f32 -1.442695, %v890_v11 }
 0x1f7   : > { %v1695_v23 = vpop.eup %1694  ;;  %1712 = vrcp.f32 %v1026_v13  ;;  %v1027_v24 = vadd.f32 1.0, %v1693_v17  ;;  %v885_v26 = vadd.f32 %v1925_v8, %v884_v20  ;;  %v1478_v29 = vmul.f32 -1.442695, %v882_v14 }
 0x1f8   : > { %v1697_v27 = vpop.eup %1696  ;;  %1714 = vrcp.f32 %v1024_v18  ;;  %v1025_v28 = vadd.f32 1.0, %v1695_v23  ;;  %1164 = vadd.xlane.f32.xlu1 %v1163_v21  ;;  %v1481_v31 = vmul.f32 -1.442695, %v893_v19 }
 0x1f9   : > { %v1699_v30 = vpop.eup %1698  ;;  %1118 = vst.msk [vmem:[%s1946_s24 + $0x70] sm:$0xff] %vm405_vm0, %v1697_v27  ;;  %1716 = vrcp.f32 %v1027_v24  ;;  %v1178_v32 = vsel %vm405_vm0, %v1697_v27, 0.0  ;;  %v1479_v34 = vmul.f32 -1.442695, %v885_v26 }
 0x1fa   : > { %v1701_v33 = vpop.eup %1700  ;;  %1116 = vst.msk [vmem:[%s1946_s24 + $0x60] sm:$0xff] %vm405_vm0, %v1699_v30  ;;  %1718 = vrcp.f32 %v1025_v28  ;;  %1179 = vadd.xlane.f32.xlu0 %v1178_v32  ;;  %v1172_v45 = vsel %vm405_vm0, %v1699_v30, 0.0 }
 0x1fb   : > { %v1703_v35 = vpop.eup %1702  ;;  %1119 = vst.msk [vmem:[%s1946_s24 + $0x78] sm:$0xff] %vm405_vm0, %v1701_v33  ;;  %1720 = vpow2.f32 %v1480_v25  ;;  %v1600_v36 = vpop.f32.mrb[28].mxu1  ;;  %v1181_v37 = vsel %vm405_vm0, %v1701_v33, 0.0 }
 0x1fc   : > { %v1705_v38 = vpop.eup %1704  ;;  %1117 = vst.msk [vmem:[%s1946_s24 + $0x68] sm:$0xff] %vm405_vm0, %v1703_v35  ;;  %1722 = vpow2.f32 %v1478_v29  ;;  %v906_v39 = vadd.f32 %v1600_v36, %v1925_v8  ;;  %1182 = vadd.xlane.f32.xlu1 %v1181_v37  ;;  %v897_v40 = vpop.f32.mrb[29].mxu1  ;;  %v1175_v50 = vsel %vm405_vm0, %v1703_v35, 0.0 }
 0x1fd   : > { %v1707_v41 = vpop.eup %1706  ;;  %v1030_v42 = vadd.f32 1.0, %v1705_v38  ;;  %1724 = vpow2.f32 %v1481_v31  ;;  %v898_v43 = vadd.f32 %v1925_v8, %v897_v40  ;;  %v1601_v44 = vpop.f32.mrb[30].mxu1 }
 0x1fe   : > { %v1709_v46 = vpop.eup %1708  ;;  %v1028_v47 = vadd.f32 1.0, %v1707_v41  ;;  %1726 = vpow2.f32 %v1479_v34  ;;  %v909_v48 = vadd.f32 %v1601_v44, %v1925_v8  ;;  %v900_v49 = vpop.f32.mrb[31].mxu1  ;;  %1173 = vadd.xlane.f32.xlu0 %v1172_v45  ;;  %v1484_v53 = vmul.f32 -1.442695, %v906_v39 }
 0x1ff   : > { %v1711_v51 = vpop.eup %1710  ;;  %1728 = vrcp.f32 %v1030_v42  ;;  %v1031_v52 = vadd.f32 1.0, %v1709_v46  ;;  %v901_v54 = vadd.f32 %v1925_v8, %v900_v49  ;;  %v1482_v56 = vmul.f32 -1.442695, %v898_v43 }
 0x200   : > { %1730 = vrcp.f32 %v1028_v47  ;;  %v1029_v55 = vadd.f32 1.0, %v1711_v51  ;;  %1176 = vadd.xlane.f32.xlu1 %v1175_v50  ;;  %v1485_v58 = vmul.f32 -1.442695, %v909_v48 }
 0x201   : > { %v1713_v57 = vpop.eup %1712  ;;  %1732 = vrcp.f32 %v1031_v52  ;;  %v1483_v60 = vmul.f32 -1.442695, %v901_v54 }
 0x202   : > { %v1715_v59 = vpop.eup %1714  ;;  %1122 = vst.msk [vmem:[%s1946_s24 + $0x90] sm:$0xff] %vm405_vm0, %v1713_v57  ;;  %1734 = vrcp.f32 %v1029_v55  ;;  %v1190_v61 = vsel %vm405_vm0, %v1713_v57, 0.0 }
 0x203   : > { %v1717_v62 = vpop.eup %1716  ;;  %1120 = vst.msk [vmem:[%s1946_s24 + $0x80] sm:$0xff] %vm405_vm0, %v1715_v59  ;;  %1736 = vpow2.f32 %v1484_v53  ;;  %1191 = vadd.xlane.f32.xlu0 %v1190_v61  ;;  %v1184_v3 = vsel %vm405_vm0, %v1715_v59, 0.0 }
 0x204   : > { %v1719_v8 = vpop.eup %1718  ;;  %1123 = vst.msk [vmem:[%s1946_s24 + $0x98] sm:$0xff] %vm405_vm0, %v1717_v62  ;;  %1738 = vpow2.f32 %v1482_v56  ;;  %v1193_v63 = vsel %vm405_vm0, %v1717_v62, 0.0 }
 0x205   : > { %v1721_v0 = vpop.eup %1720  ;;  %1121 = vst.msk [vmem:[%s1946_s24 + $0x88] sm:$0xff] %vm405_vm0, %v1719_v8  ;;  %1740 = vpow2.f32 %v1485_v58  ;;  %1194 = vadd.xlane.f32.xlu1 %v1193_v63  ;;  %v1187_v9 = vsel %vm405_vm0, %v1719_v8, 0.0 }
 0x206   : > { %v1723_v1 = vpop.eup %1722  ;;  %v1034_v2 = vadd.f32 1.0, %v1721_v0  ;;  %1742 = vpow2.f32 %v1483_v60 }
 0x207   : > { %v1725_v4 = vpop.eup %1724  ;;  %v1032_v5 = vadd.f32 1.0, %v1723_v1  ;;  %1185 = vadd.xlane.f32.xlu0 %v1184_v3 }
 0x208   : > { %v1727_v6 = vpop.eup %1726  ;;  %1744 = vrcp.f32 %v1034_v2  ;;  %v1035_v7 = vadd.f32 1.0, %v1725_v4 }
 0x209   : > { %v1729_v10 = vpop.eup %1728  ;;  %1746 = vrcp.f32 %v1032_v5  ;;  %v1033_v11 = vadd.f32 1.0, %v1727_v6  ;;  %1188 = vadd.xlane.f32.xlu1 %v1187_v9 }
 0x20a   : > { %v1731_v22 = vpop.eup %1730  ;;  %1126 = vst.msk [vmem:[%s1946_s24 + $0xb0] sm:$0xff] %vm405_vm0, %v1729_v10  ;;  %1748 = vrcp.f32 %v1035_v7  ;;  %v1202_v12 = vsel %vm405_vm0, %v1729_v10, 0.0 }
 0x20b   : > { %v1733_v13 = vpop.eup %1732  ;;  %1124 = vst.msk [vmem:[%s1946_s24 + $0xa0] sm:$0xff] %vm405_vm0, %v1731_v22  ;;  %1750 = vrcp.f32 %v1033_v11  ;;  %1203 = vadd.xlane.f32.xlu0 %v1202_v12  ;;  %v1196_v19 = vsel %vm405_vm0, %v1731_v22, 0.0 }
 0x20c   : > { %v1735_v14 = vpop.eup %1734  ;;  %1127 = vst.msk [vmem:[%s1946_s24 + $0xb8] sm:$0xff] %vm405_vm0, %v1733_v13  ;;  %v1205_v15 = vsel %vm405_vm0, %v1733_v13, 0.0 }
 0x20d   : > { %v1737_v16 = vpop.eup %1736  ;;  %1125 = vst.msk [vmem:[%s1946_s24 + $0xa8] sm:$0xff] %vm405_vm0, %v1735_v14  ;;  %1206 = vadd.xlane.f32.xlu1 %v1205_v15  ;;  %v1199_v25 = vsel %vm405_vm0, %v1735_v14, 0.0 }
 0x20e   : > { %v1739_v17 = vpop.eup %1738  ;;  %v1038_v18 = vadd.f32 1.0, %v1737_v16 }
 0x20f   : > { %v1741_v20 = vpop.eup %1740  ;;  %v1036_v21 = vadd.f32 1.0, %v1739_v17  ;;  %1197 = vadd.xlane.f32.xlu0 %v1196_v19 }
 0x210   : > { %v1743_v23 = vpop.eup %1742  ;;  %1752 = vrcp.f32 %v1038_v18  ;;  %v1039_v24 = vadd.f32 1.0, %v1741_v20 }
 0x211   : > { %1754 = vrcp.f32 %v1036_v21  ;;  %v1037_v26 = vadd.f32 1.0, %v1743_v23  ;;  %1200 = vadd.xlane.f32.xlu1 %v1199_v25 }
 0x212   : > { %v1745_v27 = vpop.eup %1744  ;;  %1756 = vrcp.f32 %v1039_v24 }
 0x213   : > { %v1747_v28 = vpop.eup %1746  ;;  %1130 = vst.msk [vmem:[%s1946_s24 + $0xd0] sm:$0xff] %vm405_vm0, %v1745_v27  ;;  %1758 = vrcp.f32 %v1037_v26  ;;  %v1214_v29 = vsel %vm405_vm0, %v1745_v27, 0.0 }
 0x214   : > { %v1749_v30 = vpop.eup %1748  ;;  %1128 = vst.msk [vmem:[%s1946_s24 + $0xc0] sm:$0xff] %vm405_vm0, %v1747_v28  ;;  %1215 = vadd.xlane.f32.xlu0 %v1214_v29  ;;  %v1208_v33 = vsel %vm405_vm0, %v1747_v28, 0.0 }
 0x215   : > { %v1751_v31 = vpop.eup %1750  ;;  %1131 = vst.msk [vmem:[%s1946_s24 + $0xd8] sm:$0xff] %vm405_vm0, %v1749_v30  ;;  %v1217_v32 = vsel %vm405_vm0, %v1749_v30, 0.0 }
 0x216   : > { %1129 = vst.msk [vmem:[%s1946_s24 + $0xc8] sm:$0xff] %vm405_vm0, %v1751_v31  ;;  %1218 = vadd.xlane.f32.xlu1 %v1217_v32  ;;  %v1211_v34 = vsel %vm405_vm0, %v1751_v31, 0.0 }
 0x218   : > { %1209 = vadd.xlane.f32.xlu0 %v1208_v33 }
 0x21a   : > { %v1753_v35 = vpop.eup %1752  ;;  %1212 = vadd.xlane.f32.xlu1 %v1211_v34 }
 0x21b   : > { %v1755_v36 = vpop.eup %1754  ;;  %1134 = vst.msk [vmem:[%s1946_s24 + $0xf0] sm:$0xff] %vm405_vm0, %v1753_v35  ;;  %v1226_v41 = vsel %vm405_vm0, %v1753_v35, 0.0 }
 0x21c   : > { %v1757_v37 = vpop.eup %1756  ;;  %1132 = vst.msk [vmem:[%s1946_s24 + $0xe0] sm:$0xff] %vm405_vm0, %v1755_v36  ;;  %v1220_v38 = vsel %vm405_vm0, %v1755_v36, 0.0 }
 0x21d   : > { %v1759_v39 = vpop.eup %1758  ;;  %1135 = vst.msk [vmem:[%s1946_s24 + $0xf8] sm:$0xff] %vm405_vm0, %v1757_v37  ;;  %1221 = vadd.xlane.f32.xlu0 %v1220_v38  ;;  %v1229_v42 = vsel %vm405_vm0, %v1757_v37, 0.0 }
 0x21e   : > { %1133 = vst.msk [vmem:[%s1946_s24 + $0xe8] sm:$0xff] %vm405_vm0, %v1759_v39  ;;  %v1223_v40 = vsel %vm405_vm0, %v1759_v39, 0.0 }
 0x21f   : > { %1224 = vadd.xlane.f32.xlu1 %v1223_v40 }
 0x221   : > { %1227 = vadd.xlane.f32.xlu0 %v1226_v41 }
 0x223   : > { %1230 = vadd.xlane.f32.xlu1 %v1229_v42 }
 0x26e   : > { %v1144_v43 = vpop.xlane.xlu1 %1143 }
 0x26f   : > { %v1234_v44 = vmul.f32 0.03125, %v1144_v43  ;;  %v1138_v45 = vpop.xlane.xlu0 %1137 }
 0x270   : > { %v1232_v46 = vmul.f32 0.03125, %v1138_v45 }
 0x271   : > { %1267 = vst.msk [vmem:[%s2068_s28 + $0x10] sm:$0xff] %vm1264_vm2, %v1234_v44 }
 0x272   : > { %1265 = vst.msk [vmem:[%s2068_s28] sm:$0xff] %vm1264_vm2, %v1232_v46  ;;  %v1147_v47 = vpop.xlane.xlu1 %1146 }
 0x273   : > { %v1235_v48 = vmul.f32 0.03125, %v1147_v47  ;;  %v1141_v49 = vpop.xlane.xlu0 %1140 }
 0x274   : > { %v1233_v50 = vmul.f32 0.03125, %v1141_v49 }
 0x275   : > { %1268 = vst.msk [vmem:[%s2068_s28 + $0x18] sm:$0xff] %vm1264_vm2, %v1235_v48 }
 0x276   : > { %1266 = vst.msk [vmem:[%s2068_s28 + $0x8] sm:$0xff] %vm1264_vm2, %v1233_v50 }
 0x277   : > { %v1156_v51 = vpop.xlane.xlu0 %1155 }
 0x278   : > { %v1238_v52 = vmul.f32 0.03125, %v1156_v51  ;;  %v1159_v53 = vpop.xlane.xlu1 %1158 }
 0x279   : > { %v1239_v54 = vmul.f32 0.03125, %v1159_v53 }
 0x27a   : > { %1271 = vst.msk [vmem:[%s2068_s28 + $0x30] sm:$0xff] %vm1264_vm2, %v1238_v52 }
 0x27b   : > { %1272 = vst.msk [vmem:[%s2068_s28 + $0x38] sm:$0xff] %vm1264_vm2, %v1239_v54  ;;  %v1150_v55 = vpop.xlane.xlu0 %1149 }
 0x27c   : > { %v1236_v56 = vmul.f32 0.03125, %v1150_v55  ;;  %v1153_v57 = vpop.xlane.xlu1 %1152 }
 0x27d   : > { %v1237_v58 = vmul.f32 0.03125, %v1153_v57 }
 0x27e   : > { %1269 = vst.msk [vmem:[%s2068_s28 + $0x20] sm:$0xff] %vm1264_vm2, %v1236_v56 }
 0x27f   : > { %1270 = vst.msk [vmem:[%s2068_s28 + $0x28] sm:$0xff] %vm1264_vm2, %v1237_v58  ;;  %v1168_v59 = vpop.xlane.xlu0 %1167 }
 0x280   : > { %v1242_v60 = vmul.f32 0.03125, %v1168_v59 }
 0x281   : > { %v1171_v61 = vpop.xlane.xlu1 %1170 }
 0x282   : > { %1275 = vst.msk [vmem:[%s2068_s28 + $0x50] sm:$0xff] %vm1264_vm2, %v1242_v60  ;;  %v1243_v62 = vmul.f32 0.03125, %v1171_v61 }
 0x283   : > { %v1162_v8 = vpop.xlane.xlu0 %1161 }
 0x284   : > { %1276 = vst.msk [vmem:[%s2068_s28 + $0x58] sm:$0xff] %vm1264_vm2, %v1243_v62  ;;  %v1240_v63 = vmul.f32 0.03125, %v1162_v8 }
 0x285   : > { %v1165_v0 = vpop.xlane.xlu1 %1164 }
 0x286   : > { %1273 = vst.msk [vmem:[%s2068_s28 + $0x40] sm:$0xff] %vm1264_vm2, %v1240_v63  ;;  %v1241_v1 = vmul.f32 0.03125, %v1165_v0 }
 0x287   : > { %v1180_v2 = vpop.xlane.xlu0 %1179 }
 0x288   : > { %1274 = vst.msk [vmem:[%s2068_s28 + $0x48] sm:$0xff] %vm1264_vm2, %v1241_v1  ;;  %v1246_v3 = vmul.f32 0.03125, %v1180_v2 }
 0x289   : > { %v1183_v4 = vpop.xlane.xlu1 %1182 }
 0x28a   : > { %1279 = vst.msk [vmem:[%s2068_s28 + $0x70] sm:$0xff] %vm1264_vm2, %v1246_v3  ;;  %v1247_v5 = vmul.f32 0.03125, %v1183_v4 }
 0x28b   : > { %v1174_v6 = vpop.xlane.xlu0 %1173 }
 0x28c   : > { %1280 = vst.msk [vmem:[%s2068_s28 + $0x78] sm:$0xff] %vm1264_vm2, %v1247_v5  ;;  %v1244_v7 = vmul.f32 0.03125, %v1174_v6 }
 0x28d   : > { %v1177_v9 = vpop.xlane.xlu1 %1176 }
 0x28e   : > { %1277 = vst.msk [vmem:[%s2068_s28 + $0x60] sm:$0xff] %vm1264_vm2, %v1244_v7  ;;  %v1245_v10 = vmul.f32 0.03125, %v1177_v9 }
 0x290   : > { %1278 = vst.msk [vmem:[%s2068_s28 + $0x68] sm:$0xff] %vm1264_vm2, %v1245_v10  ;;  %v1192_v11 = vpop.xlane.xlu0 %1191 }
 0x291   : > { %v1250_v22 = vmul.f32 0.03125, %v1192_v11 }
 0x292   : > { %v1195_v12 = vpop.xlane.xlu1 %1194 }
 0x293   : > { %1283 = vst.msk [vmem:[%s2068_s28 + $0x90] sm:$0xff] %vm1264_vm2, %v1250_v22  ;;  %v1251_v13 = vmul.f32 0.03125, %v1195_v12 }
 0x294   : > { %v1186_v14 = vpop.xlane.xlu0 %1185 }
 0x295   : > { %1284 = vst.msk [vmem:[%s2068_s28 + $0x98] sm:$0xff] %vm1264_vm2, %v1251_v13  ;;  %v1248_v15 = vmul.f32 0.03125, %v1186_v14 }
 0x296   : > { %v1189_v16 = vpop.xlane.xlu1 %1188 }
 0x297   : > { %1281 = vst.msk [vmem:[%s2068_s28 + $0x80] sm:$0xff] %vm1264_vm2, %v1248_v15  ;;  %v1249_v17 = vmul.f32 0.03125, %v1189_v16 }
 0x298   : > { %v1204_v18 = vpop.xlane.xlu0 %1203 }
 0x299   : > { %1282 = vst.msk [vmem:[%s2068_s28 + $0x88] sm:$0xff] %vm1264_vm2, %v1249_v17  ;;  %v1254_v19 = vmul.f32 0.03125, %v1204_v18 }
 0x29a   : > { %v1207_v20 = vpop.xlane.xlu1 %1206 }
 0x29b   : > { %1287 = vst.msk [vmem:[%s2068_s28 + $0xb0] sm:$0xff] %vm1264_vm2, %v1254_v19  ;;  %v1255_v21 = vmul.f32 0.03125, %v1207_v20 }
 0x29c   : > { %v1198_v23 = vpop.xlane.xlu0 %1197 }
 0x29d   : > { %1288 = vst.msk [vmem:[%s2068_s28 + $0xb8] sm:$0xff] %vm1264_vm2, %v1255_v21  ;;  %v1252_v24 = vmul.f32 0.03125, %v1198_v23 }
 0x29e   : > { %v1201_v25 = vpop.xlane.xlu1 %1200 }
 0x29f   : > { %1285 = vst.msk [vmem:[%s2068_s28 + $0xa0] sm:$0xff] %vm1264_vm2, %v1252_v24  ;;  %v1253_v26 = vmul.f32 0.03125, %v1201_v25 }
 0x2a1   : > { %1286 = vst.msk [vmem:[%s2068_s28 + $0xa8] sm:$0xff] %vm1264_vm2, %v1253_v26  ;;  %v1216_v27 = vpop.xlane.xlu0 %1215 }
 0x2a2   : > { %v1258_v28 = vmul.f32 0.03125, %v1216_v27 }
 0x2a3   : > { %v1219_v29 = vpop.xlane.xlu1 %1218 }
 0x2a4   : > { %1291 = vst.msk [vmem:[%s2068_s28 + $0xd0] sm:$0xff] %vm1264_vm2, %v1258_v28  ;;  %v1259_v30 = vmul.f32 0.03125, %v1219_v29 }
 0x2a5   : > { %v1210_v31 = vpop.xlane.xlu0 %1209 }
 0x2a6   : > { %1292 = vst.msk [vmem:[%s2068_s28 + $0xd8] sm:$0xff] %vm1264_vm2, %v1259_v30  ;;  %v1256_v32 = vmul.f32 0.03125, %v1210_v31 }
 0x2a7   : > { %v1213_v33 = vpop.xlane.xlu1 %1212 }
 0x2a8   : > { %1289 = vst.msk [vmem:[%s2068_s28 + $0xc0] sm:$0xff] %vm1264_vm2, %v1256_v32  ;;  %v1257_v34 = vmul.f32 0.03125, %v1213_v33 }
 0x2aa   : > { %1290 = vst.msk [vmem:[%s2068_s28 + $0xc8] sm:$0xff] %vm1264_vm2, %v1257_v34  ;;  %v1222_v35 = vpop.xlane.xlu0 %1221 }
 0x2ab   : > { %v1260_v36 = vmul.f32 0.03125, %v1222_v35 }
 0x2ac   : > { %v1225_v37 = vpop.xlane.xlu1 %1224 }
 0x2ad   : > { %1293 = vst.msk [vmem:[%s2068_s28 + $0xe0] sm:$0xff] %vm1264_vm2, %v1260_v36  ;;  %v1261_v38 = vmul.f32 0.03125, %v1225_v37 }
 0x2ae   : > { %v1228_v39 = vpop.xlane.xlu0 %1227 }
 0x2af   : > { %1294 = vst.msk [vmem:[%s2068_s28 + $0xe8] sm:$0xff] %vm1264_vm2, %v1261_v38  ;;  %v1262_v40 = vmul.f32 0.03125, %v1228_v39 }
 0x2b0   : > { %v1231_v41 = vpop.xlane.xlu1 %1230 }
 0x2b1   : > { %1295 = vst.msk [vmem:[%s2068_s28 + $0xf0] sm:$0xff] %vm1264_vm2, %v1262_v40  ;;  %v1263_v42 = vmul.f32 0.03125, %v1231_v41 }
 0x2b3   : > { %1296 = vst.msk [vmem:[%s2068_s28 + $0xf8] sm:$0xff] %vm1264_vm2, %v1263_v42 }
 0x2b4 PF: > { %s17_s21 = sadd.s32 1, %s1766_s21  }
 0x2b5   : > { %p14_p4 = scmp.ge.s32.totalorder %s17_s21, 4  }
 0x2b7   :  { %16 = sbr.rel (!%p14_p4) target bundleno = 1 (0x1), region = 82 }

</bundles_post_ra>
